<compile_context>
chip_gen: v7x
topology: tpu7x:2x2x1
jax: 0.10.0
libtpu: 0.0.40
codegen_flags: <defaults>
</compile_context>

<pallas_src>
import functools

import jax
import jax.numpy as jnp
from jax.experimental import pallas as pl
from jax.experimental.pallas import tpu as pltpu


def _bilinear_matrix(in_size: int, out_size: int) -> jnp.ndarray:
    """Dense (out_size, in_size) interpolation matrix matching PyTorch
    nn.Upsample(mode='bilinear', align_corners=False) along one axis."""
    scale = in_size / out_size
    dst = jnp.arange(out_size, dtype=jnp.float32)
    src = (dst + 0.5) * scale - 0.5
    src = jnp.maximum(src, 0.0)                        # PyTorch clamps negative src to 0
    i0 = jnp.minimum(jnp.floor(src).astype(jnp.int32), in_size - 1)
    i1 = jnp.minimum(i0 + 1, in_size - 1)
    lam = jnp.clip(src - i0.astype(jnp.float32), 0.0, 1.0)
    rows = jnp.arange(out_size)
    A = jnp.zeros((out_size, in_size), jnp.float32)
    A = A.at[rows, i0].add(1.0 - lam)
    A = A.at[rows, i1].add(lam)
    return A                                           # every row sums to 1


def _row_tile(M: int, max_rows: int = 128) -> int:
    """Largest multiple-of-8 divisor of M that is <= max_rows (full M if none)."""
    if M <= max_rows:
        return M
    start = max_rows - (max_rows % 8)
    for tm in range(start, 7, -8):
        if M % tm == 0:
            return tm
    return M


def _upsample_kernel(b_ref, x_ref, awt_ref, bias_ref, o_ref):
    # b_ref   : (TM, Cin*H)    bf16  rows of kron(Wconv, A_h) for this output-row tile
    # x_ref   : (1, Cin*H, W)  bf16  one batch element, NCHW flattened (lane dim = W)
    # awt_ref : (W, Wo)        bf16  width interpolation matrix, transposed
    # bias_ref: (TM, 1)        f32   per-output-row bias (bias[c] repeated Ho times)
    # o_ref   : (1, TM, Wo)    f32   output rows (c*Ho + ho), lane dim = Wo
    # Fused (1x1 conv + height interp) as one big matmul, f32 accumulation on the MXU.
    t = jnp.dot(b_ref[...], x_ref[0], preferred_element_type=jnp.float32)     # (TM, W)
    # Width interp as a second matmul; bias added last (interp rows sum to 1).
    out = jnp.dot(t.astype(awt_ref.dtype), awt_ref[...],
                  preferred_element_type=jnp.float32)                         # (TM, Wo)
    o_ref[0] = (out + bias_ref[...]).astype(o_ref.dtype)


def upsample_forward(x_nchw, weight, bias, up_factor, *, compute_dtype=jnp.bfloat16):
    """x_nchw: (N, Cin, H, W); weight: (Cout, Cin, 1, 1); bias: (Cout,). Returns NCHW."""
    N, Cin, H, W = x_nchw.shape
    Cout = weight.shape[0]
    Ho, Wo = H * up_factor, W * up_factor
    out_dtype = x_nchw.dtype

    # Fused operator B[c*Ho + p, k*H + h] = Wconv[c, k] * A_h[p, h].
    w2d = weight.reshape(Cout, Cin).astype(jnp.float32)
    ah = _bilinear_matrix(H, Ho)                                   # (Ho, H)
    awt = _bilinear_matrix(W, Wo).T                                # (W, Wo)
    b_op = jnp.einsum('ck,ph->cpkh', w2d, ah).reshape(Cout * Ho, Cin * H)
    bias_rows = jnp.repeat(bias.astype(jnp.float32), Ho).reshape(Cout * Ho, 1)

    # Contiguous (free) reshape; bf16 for HBM/VMEM traffic, f32 accumulation in-kernel.
    x_flat = x_nchw.reshape(N, Cin * H, W).astype(compute_dtype)
    b_op = b_op.astype(compute_dtype)
    awt = awt.astype(compute_dtype)

    M = Cout * Ho
    TM = _row_tile(M)
    grid = (N, M // TM)

    out = pl.pallas_call(
        _upsample_kernel,
        out_shape=jax.ShapeDtypeStruct((N, M, Wo), out_dtype),
        grid_spec=pltpu.PrefetchScalarGridSpec(
            num_scalar_prefetch=0,
            grid=grid,
            in_specs=[
                pl.BlockSpec((TM, Cin * H), lambda n, m: (m, 0)),       # kron operator
                pl.BlockSpec((1, Cin * H, W), lambda n, m: (n, 0, 0)),  # x (resident over m)
                pl.BlockSpec((W, Wo), lambda n, m: (0, 0)),             # A_w^T
                pl.BlockSpec((TM, 1), lambda n, m: (m, 0)),             # per-row bias
            ],
            out_specs=pl.BlockSpec((1, TM, Wo), lambda n, m: (n, m, 0)),
        ),
        compiler_params=pltpu.CompilerParams(
            dimension_semantics=("parallel", "parallel"),
            # Tiles here are tiny; explicit limit is safe on every generation
            # (< v7x's 64 MiB physical VMEM, >= the v5e/v6e scoped defaults).
            vmem_limit_bytes=32 * 1024 * 1024,
        ),
    )(b_op, x_flat, awt, bias_rows)

    # Contiguous (free) reshape back to NCHW: rows are (c*Ho + ho).
    return out.reshape(N, Cout, Ho, Wo)


def init_upsample_params(key, in_channel, out_channel):
    # kaiming_normal_(weight, a=1), fan_in mode:
    #   gain = sqrt(2 / (1 + a^2)) = 1 ; fan_in = in_channel * 1 * 1
    std = 1.0 / jnp.sqrt(jnp.float32(in_channel))
    weight = std * jax.random.normal(key, (out_channel, in_channel, 1, 1),
                                     dtype=jnp.float32)
    bias = jnp.zeros((out_channel,), jnp.float32)
    return weight, bias


if __name__ == "__main__":
    in_channel, out_channel, up_factor = 4, 8, 2
    N, H, W = 2, 16, 16
    Ho, Wo = H * up_factor, W * up_factor

    key = jax.random.PRNGKey(0)
    k_w, k_x = jax.random.split(key)
    weight, bias = init_upsample_params(k_w, in_channel, out_channel)
    x = jax.random.normal(k_x, (N, in_channel, H, W), dtype=jnp.float32)

    fwd = jax.jit(functools.partial(upsample_forward, up_factor=up_factor))
    out = fwd(x, weight, bias)
    jax.block_until_ready(out)
    assert out.shape == (N, out_channel, Ho, Wo), out.shape

    # f32 reference (conv -> height interp -> width interp); lenient tolerance for the
    # bf16 operand path of the kernel.
    w2d = weight.reshape(out_channel, in_channel)
    ah = _bilinear_matrix(H, Ho)
    aw = _bilinear_matrix(W, Wo)
    ref = jnp.einsum('ok,nkhw->nohw', w2d, x, precision='highest')
    ref = ref + bias[None, :, None, None]
    ref = jnp.einsum('ph,nchw->ncpw', ah, ref, precision='highest')
    ref = jnp.einsum('qw,ncpw->ncpq', aw, ref, precision='highest')
    rel_err = jnp.max(jnp.abs(out - ref)) / (jnp.max(jnp.abs(ref)) + 1e-6)
    assert float(rel_err) < 5e-2, float(rel_err)

    print("KERNEL_OK")
</pallas_src>

<mosaic_0001>
module attributes {stable_mosaic.version = 11 : i64} {
  func.func private @main(%arg0: i32) attributes {dimension_semantics = [#tpu.dimension_semantics<core_parallel>], iteration_bounds = array<i64: 2>, tpu.core_type = #tpu.core_type<sc_scalar_subcore>, window_params = []} {
    return
  }
}

module attributes {stable_mosaic.version = 11 : i64} {
  func.func private @main(%arg0: i32) attributes {dimension_semantics = [#tpu.dimension_semantics<core_parallel>], iteration_bounds = array<i64: 2>, tpu.core_type = #tpu.core_type<sc_scalar_subcore>, window_params = []} {
    return
  }
}

module attributes {stable_mosaic.version = 11 : i64} {
  func.func @_upsample_kernel(%arg0: i32, %arg1: i32, %arg2: memref<128x64xbf16, #tpu.memory_space<vmem>>, %arg3: memref<1x64x16xbf16, #tpu.memory_space<vmem>>, %arg4: memref<16x32xbf16, #tpu.memory_space<vmem>>, %arg5: memref<128x1xf32, #tpu.memory_space<vmem>>, %arg6: memref<1x128x32xf32, #tpu.memory_space<vmem>>) attributes {dimension_semantics = [#tpu.dimension_semantics<parallel>, #tpu.dimension_semantics<parallel>], iteration_bounds = array<i64: 2, 2>, scalar_prefetch = 0 : i64, scratch_operands = 0 : i64, tpu.core_type = #tpu.core_type<tc>, window_params = [{transform_indices = @transform_0, window_bounds = array<i64: 128, 64>}, {transform_indices = @transform_1, window_bounds = array<i64: 1, 64, 16>}, {pipeline_mode = #tpu.pipeline_mode<synchronous>, transform_indices = @transform_2, window_bounds = array<i64: 16, 32>}, {transform_indices = @transform_3, window_bounds = array<i64: 128, 1>}, {transform_indices = @transform_4, window_bounds = array<i64: 1, 128, 32>}]} {
    %c0 = arith.constant 0 : index
    %c0_0 = arith.constant 0 : index
    %0 = vector.load %arg2[%c0, %c0_0] : memref<128x64xbf16, #tpu.memory_space<vmem>>, vector<128x64xbf16>
    %c0_1 = arith.constant 0 : index
    %c0_2 = arith.constant 0 : index
    %c0_3 = arith.constant 0 : index
    %1 = vector.load %arg3[%c0_1, %c0_2, %c0_3] : memref<1x64x16xbf16, #tpu.memory_space<vmem>>, vector<1x64x16xbf16>
    %2 = vector.shape_cast %1 : vector<1x64x16xbf16> to vector<64x16xbf16>
    %cst = arith.constant dense<0.000000e+00> : vector<128x16xf32>
    %3 = tpu.matmul %0, %2, %cst {dimension_numbers = #tpu.dot_dimension_numbers<[1], [0], [0], [1], [0, 0, 1, 1], [], []>} : vector<128x64xbf16>, vector<64x16xbf16>, vector<128x16xf32> -> vector<128x16xf32>
    %4 = arith.truncf %3 : vector<128x16xf32> to vector<128x16xbf16>
    %c0_4 = arith.constant 0 : index
    %c0_5 = arith.constant 0 : index
    %5 = vector.load %arg4[%c0_4, %c0_5] : memref<16x32xbf16, #tpu.memory_space<vmem>>, vector<16x32xbf16>
    %cst_6 = arith.constant dense<0.000000e+00> : vector<128x32xf32>
    %6 = tpu.matmul %4, %5, %cst_6 {dimension_numbers = #tpu.dot_dimension_numbers<[1], [0], [0], [1], [0, 0, 1, 1], [], []>} : vector<128x16xbf16>, vector<16x32xbf16>, vector<128x32xf32> -> vector<128x32xf32>
    %c0_7 = arith.constant 0 : index
    %c0_8 = arith.constant 0 : index
    %7 = vector.load %arg5[%c0_7, %c0_8] : memref<128x1xf32, #tpu.memory_space<vmem>>, vector<128x1xf32>
    %8 = vector.broadcast %7 : vector<128x1xf32> to vector<128x32xf32>
    %9 = arith.addf %6, %8 : vector<128x32xf32>
    %c0_9 = arith.constant 0 : index
    %c0_10 = arith.constant 0 : index
    %c0_11 = arith.constant 0 : index
    %10 = vector.load %arg6[%c0_9, %c0_10, %c0_11] : memref<1x128x32xf32, #tpu.memory_space<vmem>>, vector<1x128x32xf32>
    %11 = vector.shape_cast %10 : vector<1x128x32xf32> to vector<128x32xf32>
    %12 = vector.shape_cast %9 : vector<128x32xf32> to vector<1x128x32xf32>
    tpu.vector_store %arg6[%c0_9, %c0_10, %c0_11], %12 {strides = array<i32>} : memref<1x128x32xf32, #tpu.memory_space<vmem>>, vector<1x128x32xf32>,
    return
  }
  func.func @transform_0(%arg0: i32, %arg1: i32) -> (i32, i32) {
    %c0_i32 = arith.constant 0 : i32
    %c0_i32_0 = arith.constant 0 : i32
    return %arg1, %c0_i32 : i32, i32
  }
  func.func @transform_1(%arg0: i32, %arg1: i32) -> (i32, i32, i32) {
    %c0_i32 = arith.constant 0 : i32
    %c0_i32_0 = arith.constant 0 : i32
    %c0_i32_1 = arith.constant 0 : i32
    return %arg0, %c0_i32, %c0_i32_0 : i32, i32, i32
  }
  func.func @transform_2(%arg0: i32, %arg1: i32) -> (i32, i32) {
    %c0_i32 = arith.constant 0 : i32
    %c0_i32_0 = arith.constant 0 : i32
    %c0_i32_1 = arith.constant 0 : i32
    return %c0_i32, %c0_i32_0 : i32, i32
  }
  func.func @transform_3(%arg0: i32, %arg1: i32) -> (i32, i32) {
    %c0_i32 = arith.constant 0 : i32
    %c0_i32_0 = arith.constant 0 : i32
    return %arg1, %c0_i32 : i32, i32
  }
  func.func @transform_4(%arg0: i32, %arg1: i32) -> (i32, i32, i32) {
    %c0_i32 = arith.constant 0 : i32
    %c0_i32_0 = arith.constant 0 : i32
    return %arg0, %arg1, %c0_i32 : i32, i32, i32
  }
}

</mosaic_0001>

<bundles_post_ra>
// kernel: upsample_forward.1
= control target key start
LH: loop header
LB: loop body
LE: loop exit
PB: predicated region body
PF: predicated region fallthrough
CT: control target
= control target key end

     0   :  { %9 = vsyncpa [#allocation3], 0  ;;  %s1369_s0 = inlined_call_operand.vmem [shape: bf16[256,64], index: 0, kind: input, shape index: {}]   ;;  %s1370_s1 = inlined_call_operand.vmem [shape: bf16[2,64,16], index: 1, kind: input, shape index: {}]   ;;  %s1371_s2 = inlined_call_operand.vmem [shape: bf16[16,32], index: 2, kind: input, shape index: {}]   ;;  %s1372_s3 = inlined_call_operand.vmem [shape: f32[256,1], index: 3, kind: input, shape index: {}]   ;;  %s1373_s4 = inlined_call_operand.hbm [shape: f32[2,256,32], index: 4, kind: output, shape index: {}]  }
   0x1   :  { %11 = vsyncpa [#allocation3 + $0x1], 0  ;;  %s1158_s15 = smov 0   ;;  %s1160_s16 = smov 0  }
   0x2   :  { %s1162_s17 = smov 0   ;;  %s1164_s18 = smov 0  }
   0x3   :  { %s1166_s19 = smov 0   ;;  %s1168_s20 = smov 0  }
   0x4   :  { %s1170_s21 = smov 0   ;;  %s1172_s22 = smov 0  }
   0x5 LB: > { %s833_s23 = sadd.s32 4294967295, %s1127_s22   ;;  %s834_s24 = sadd.s32 4294967294, %s1127_s22   ;;  %s1127_s22 = sphi %s1172_s22, %s17_s22   ;;  %s1123_s21 = sphi %s1170_s21, %s1382_s21   ;;  %s1119_s20 = sphi %s1168_s20, %s1381_s20   ;;  %s1115_s19 = sphi %s1166_s19, %s1380_s19   ;;  %s1111_s18 = sphi %s1164_s18, %s1379_s18   ;;  %s1107_s17 = sphi %s1162_s17, %s1378_s17   ;;  %s1103_s16 = sphi %s1160_s16, %s1377_s16   ;;  %s1099_s15 = sphi %s1158_s15, %s1376_s15  }
   0x6   : > { %s26_s25 = sadd.s32 1, %s1119_s20  ;;  %s29_s26 = sadd.s32 1, %s1123_s21 }
   0x7   : > { %p27_p0 = scmp.ge.s32.totalorder %s26_s25, 2  ;;  %p147_p1 = scmp.ne.s32.totalorder %s1107_s17, %s1103_s16 }
   0x8   : > { %p148_p2 = scmp.eq.s32.totalorder %s833_s23, 3  ;;  %p153_p5 = scmp.ne.s32.totalorder %s1103_s16, %s1099_s15 }
   0x9   : > { %s1384_s25 = smov (%p27_p0, %s26_s25), 0  ;;  %s1386_s26 = smov (!%p27_p0, %s29_s26), %s1123_s21 }
   0xa   : > { %s133_s27 = ssub.s32 %s1119_s20, %s1384_s25  ;;  %p1209_p3 = por %p148_p2, %p147_p1 }
   0xb   : > { %p31_p4 = scmp.ge.s32.totalorder %s1386_s26, 2  ;;  %p154_p6 = scmp.eq.s32.totalorder %s834_s24, 3 }
   0xc   : > { %p837_p7 = scmp.ge.s32.totalorder %s1127_s22, 1  ;;  %p201_p9 = scmp.lt.s32.totalorder %s1127_s22, 5 }
   0xd   : > { %s1388_s26 = smov (%p31_p4, %s1386_s26), 0  ;;  %p1218_p8 = por %p154_p6, %p153_p5 }
   0xe   : > { %s132_s30 = ssub.s32 %s1123_s21, %s1388_s26  ;;  %s137_s5 = sadd.s32 1, %s1107_s17 }
   0xf   : > { %s134_s6 = sor.u32 %s133_s27, %s132_s30  ;;  %p202_p10 = pnand %p837_p7, %p201_p9 }
  0x10   : > { %p135_p11 = scmp.eq.s32.totalorder %s134_s6, 0  ;;  %p243_p12 = scmp.lt.s32.totalorder (!%p202_p10), %s1115_s19, 1  ;;  %vm344_vm0 = vcmask (!%p202_p10), 523264   ;;  %v1032_v12 = vld [vmem:[%s1371_s2] sm:$0xff] (!%p202_p10)   ;;  %v1129_v13 = vmov (!%p202_p10), 0   ;;  %vm578_vm1 = vcmask (!%p202_p10), 130048  }
  0x11   : > { %205 = sbr.rel (%p202_p10) target bundleno = 519 (0x207), region = 36  ;;  %s1231_s8 = sshll.u32 (!%p202_p10), %s1111_s18, 4  ;;  %926 = vmatprep.subr.bf16.mxu1 (!%p202_p10), %v1032_v12  ;;  %1019 = vset.pattern.permute.xlu1 (!%p202_p10), %v1129_v13  ;;  %vm700_vm2 = vcmask (!%p202_p10), 261120  }
  0x12   : > { %s1227_s7 = scalar_select %p135_p11, %s1107_s17, %s137_s5  }
  0x13   : > { %p238_p13 = scmp.lt.s32.totalorder (!%p202_p10), %s1231_s8, 31  ;;  %927 = vmatpush3.bf16.msra.mxu1 (!%p202_p10), %v1032_v12  ;;  %1018 = vset.pattern.permute.xlu0 (!%p202_p10), %v1129_v13 }
  0x18   : > { %s244_s9 = scalar_select %p243_p12, %s1115_s19, 1 }
  0x19   : > { %s1236_s10 = scalar_select %p238_p13, %s1231_s8, 31 }
  0x1a   : > { %s880_s11 = sshll.u32 %s244_s9, 5  ;;  %s1130_s9 = smov [#allocation2]  }
  0x1b   : > { %s247_s14 = scalar_lea.vmem %s1370_s1, %s880_s11  ;;  %s840_s23 = sshll.u32 %s1236_s10, 2 }
  0x1c   : > { %v1020_v0 = vld [vmem:[%s247_s14] sm:$0xff]   ;;  %v1021_v1 = vld [vmem:[%s247_s14 + $0x8] sm:$0xff]   ;;  %s241_s18 = scalar_lea.vmem %s1369_s0, %s840_s23  ;;  %v1022_v2 = vld [vmem:[%s247_s14 + $0x10] sm:$0xff]   ;;  %s844_s6 = sshll.u32 %s1236_s10, 3 }
  0x1d   : > { %902 = vmatprep.subr.bf16.mxu0 %v1020_v0  ;;  %v1024_v3 = vld [vmem:[%s241_s18] sm:$0xff]   ;;  %v1023_v4 = vld [vmem:[%s247_s14 + $0x18] sm:$0xff]   ;;  %v1025_v5 = vld [vmem:[%s241_s18 + $0x8] sm:$0xff]   ;;  %s252_s12 = scalar_lea.vmem %s1372_s3, %s844_s6  ;;  %s234_s10 = sand.u32 1, %s1103_s16  }
  0x1e   : > { %903 = vmatpush3.bf16.msra.mxu0 %v1020_v0  ;;  %910 = vmatprep.mubr.msk.bf16.mxu0 %vm344_vm0, %v1024_v3  ;;  %v1026_v6 = vld [vmem:[%s241_s18 + $0x10] sm:$0xff]   ;;  %v1027_v7 = vld [vmem:[%s241_s18 + $0x18] sm:$0xff]   ;;  %v1028_v8 = vld [vmem:[%s241_s18 + $0x20] sm:$0xff]   ;;  %s838_s13 = sshll.u32 %s234_s10, 7  ;;  %s876_s23 = sshll.u32 %s1115_s19, 5 }
  0x1f   : > { %904 = vmatprep.subr.bf16.mxu0 %v1021_v1  ;;  %v1029_v9 = vld [vmem:[%s241_s18 + $0x28] sm:$0xff]   ;;  %v1030_v10 = vld [vmem:[%s241_s18 + $0x30] sm:$0xff]   ;;  %v1031_v11 = vld [vmem:[%s241_s18 + $0x38] sm:$0xff]   ;;  %s1271_s14 = scalar_lea.vmem [#allocation2], %s838_s13  ;;  %s730_s24 = sadd.s32 %s876_s23, %s1231_s8 }
  0x20   : > { %v478_v14 = vld [vmem:[%s252_s12 + $0x10] sm:$0xff]  ;;  %v476_v15 = vld [vmem:[%s252_s12] sm:$0xff]  ;;  %v479_v16 = vld [vmem:[%s252_s12 + $0x18] sm:$0xff]  ;;  %s877_s19 = sshll.u32 %s730_s24, 7  ;;  %s733_s27 = sshll.u32 %s1271_s14, 4  ;;  %s1307_s27 = int_to_ptr.vmem [resolvable:$true] %s733_s27 }
  0x21   : > { %504 = vperm.xlu1 %1019, %v478_v14   ;;  %494 = vperm.xlu0 %1018, %v476_v15   ;;  %v477_v17 = vld [vmem:[%s252_s12 + $0x8] sm:$0xff]  ;;  %v480_v19 = vld [vmem:[%s252_s12 + $0x20] sm:$0xff]  ;;  %v483_v20 = vld [vmem:[%s252_s12 + $0x38] sm:$0xff]  ;;  %s1303_s30 = scalar_lea.hbm %s1373_s4, %s877_s19  ;;  %s1317_s5 = scalar_lea.sflag [#allocation3], %s234_s10 }
  0x22   : > { %905 = vmatpush3.bf16.msra.mxu0 %v1021_v1  ;;  %v481_v18 = vld [vmem:[%s252_s12 + $0x28] sm:$0xff]  ;;  %v482_v21 = vld [vmem:[%s252_s12 + $0x30] sm:$0xff]  ;;  %v484_v23 = vld [vmem:[%s252_s12 + $0x40] sm:$0xff]  ;;  %s1033_s6 = scalar_lea.vmem %s1307_s27, 2048  ;;  %s1037_s11 = sshll.u32 %s1130_s9, 4  ;;  %s1038_s11 = int_to_ptr.vmem [resolvable:$false] %s1037_s11 }
  0x23   : > { %906 = vmatprep.subr.bf16.mxu0 %v1022_v2  ;;  %v485_v22 = vld [vmem:[%s252_s12 + $0x48] sm:$0xff]  ;;  %v487_v24 = vld [vmem:[%s252_s12 + $0x58] sm:$0xff]  ;;  %v486_v25 = vld [vmem:[%s252_s12 + $0x50] sm:$0xff]  ;;  %p1034_p0 = scmp.ne.s32.totalorder %s1307_s27, %s1033_s6  ;;  %p1040_p4 = scmp.lt.s32.totalorder %s1307_s27, %s1038_s11 }
  0x24   : > { %v489_v26 = vld [vmem:[%s252_s12 + $0x68] sm:$0xff]  ;;  %v488_v27 = vld [vmem:[%s252_s12 + $0x60] sm:$0xff]  ;;  %v491_v28 = vld [vmem:[%s252_s12 + $0x78] sm:$0xff] }
  0x25   : > { %509 = vperm.xlu1 %1019, %v479_v16   ;;  %499 = vperm.xlu0 %1018, %v477_v17   ;;  %v490_v29 = vld [vmem:[%s252_s12 + $0x70] sm:$0xff]  ;;  %p1035_p1 = pnand %p1034_p0, %p1209_p3  ;;  %s1039_s12 = scalar_lea.vmem %s1038_s11, 4096 }
  0x26   : > { %907 = vmatpush3.bf16.msra.mxu0 %v1022_v2  ;;  %p1041_p5 = scmp.lt.s32.totalorder %s1039_s12, %s1033_s6 }
  0x27   : > { %908 = vmatprep.subr.bf16.mxu0 %v1023_v4  ;;  %p1036_p2 = pneg %p1035_p1 }
  0x28   : > { %p1042_p6 = por %p1041_p5, %p1040_p4 }
  0x29   : > { %519 = vperm.xlu1 %1019, %v481_v18   ;;  %514 = vperm.xlu0 %1018, %v480_v19  }
  0x2a   : > { %909 = vmatpush3.bf16.msra.mxu0 %v1023_v4  ;;  %p1043_p7 = pnand %p1042_p6, %p1036_p2 }
  0x2d   : > { %911 = vmatmul.mubr.msk.bf16.vlgmr.msra.gmra.mrb[0].mxu0 %vm344_vm0, %v1025_v5  ;;  %529 = vperm.xlu1 %1019, %v483_v20  }
  0x2e   : > { %914 = vmatprep.mubr.msk.bf16.mxu0 %vm344_vm0, %v1026_v6  ;;  %524 = vperm.xlu0 %1018, %v482_v21  }
  0x31   : > { %539 = vperm.xlu1 %1019, %v485_v22  }
  0x32   : > { %534 = vperm.xlu0 %1018, %v484_v23  }
  0x35   : > { %915 = vmatmul.mubr.msk.bf16.gmra.mrb[4].mxu0 %vm344_vm0, %v1027_v7  ;;  %549 = vperm.xlu1 %1019, %v487_v24  }
  0x36   : > { %918 = vmatprep.mubr.msk.bf16.mxu0 %vm344_vm0, %v1028_v8  ;;  %544 = vperm.xlu0 %1018, %v486_v25  }
  0x39   : > { %559 = vperm.xlu1 %1019, %v489_v26  }
  0x3a   : > { %554 = vperm.xlu0 %1018, %v488_v27  }
  0x3d   : > { %919 = vmatmul.mubr.msk.bf16.gmra.mrb[8].mxu0 %vm344_vm0, %v1029_v9  ;;  %569 = vperm.xlu1 %1019, %v491_v28  }
  0x3e   : > { %922 = vmatprep.mubr.msk.bf16.mxu0 %vm344_vm0, %v1030_v10  ;;  %564 = vperm.xlu0 %1018, %v490_v29  }
  0x45   : > { %923 = vmatmul.mubr.msk.bf16.gmra.mrb[12].mxu0 %vm344_vm0, %v1031_v11 }
  0xa0   : > { %v495_v54 = vpop.permute.xlu0 %494  ;;  %v505_v55 = vpop.permute.xlu1 %504 }
  0xa4   : > { %v500_v56 = vpop.permute.xlu0 %499  ;;  %v510_v57 = vpop.permute.xlu1 %509 }
  0xa8   : > { %v515_v58 = vpop.permute.xlu0 %514  ;;  %v520_v59 = vpop.permute.xlu1 %519 }
  0xac   : > { %v530_v0 = vpop.permute.xlu1 %529 }
  0xad   : > { %v525_v60 = vpop.permute.xlu0 %524 }
  0xb0   : > { %v540_v7 = vpop.permute.xlu1 %539 }
  0xb1   : > { %v535_v6 = vpop.permute.xlu0 %534 }
  0xb4   : > { %v550_v17 = vpop.permute.xlu1 %549 }
  0xb5   : > { %v545_v15 = vpop.permute.xlu0 %544 }
  0xb8   : > { %v560_v26 = vpop.permute.xlu1 %559 }
  0xb9   : > { %v555_v21 = vpop.permute.xlu0 %554 }
  0xbd   : > { %v565_v28 = vpop.permute.xlu0 %564 }
 0x100   : > { %v912_v30 = vpop.f32.mrb[0].mxu0 }
 0x101   : > { %v403_v31 = vpop.f32.mrb[1].mxu0 }
 0x102   : > { %v913_v32 = vpop.f32.mrb[2].mxu0 }
 0x103   : > { %v467_v33 = vpack.c.bf16 %v913_v32, %v912_v30  ;;  %v406_v34 = vpop.f32.mrb[3].mxu0  ;;  %v570_v32 = vpop.permute.xlu1 %569 }
 0x104   : > { %v466_v35 = vpack.c.bf16 %v406_v34, %v403_v31 }
 0x106   : > { %928 = vmatprep.mubr.msk.bf16.mxu1 %vm578_vm1, %v466_v35 }
 0x107   : > { %929 = vmatmul.mubr.msk.bf16.vlgmr.msra.gmra.mrb[0].mxu1 %vm578_vm1, %v467_v33 }
 0x108   : > { %v916_v36 = vpop.f32.mrb[4].mxu0 }
 0x109   : > { %v419_v37 = vpop.f32.mrb[5].mxu0 }
 0x10a   : > { %v917_v38 = vpop.f32.mrb[6].mxu0 }
 0x10b   : > { %v469_v39 = vpack.c.bf16 %v917_v38, %v916_v36  ;;  %v422_v40 = vpop.f32.mrb[7].mxu0 }
 0x10c   : > { %v468_v41 = vpack.c.bf16 %v422_v40, %v419_v37 }
 0x10e   : > { %932 = vmatprep.mubr.msk.bf16.mxu1 %vm578_vm1, %v468_v41 }
 0x10f   : > { %933 = vmatmul.mubr.msk.bf16.gmra.mrb[4].mxu1 %vm578_vm1, %v469_v39 }
 0x110   : > { %v920_v42 = vpop.f32.mrb[8].mxu0 }
 0x111   : > { %v435_v43 = vpop.f32.mrb[9].mxu0 }
 0x112   : > { %v921_v44 = vpop.f32.mrb[10].mxu0 }
 0x113   : > { %v471_v45 = vpack.c.bf16 %v921_v44, %v920_v42  ;;  %v438_v46 = vpop.f32.mrb[11].mxu0 }
 0x114   : > { %v470_v47 = vpack.c.bf16 %v438_v46, %v435_v43 }
 0x116   : > { %936 = vmatprep.mubr.msk.bf16.mxu1 %vm578_vm1, %v470_v47 }
 0x117   : > { %937 = vmatmul.mubr.msk.bf16.gmra.mrb[8].mxu1 %vm578_vm1, %v471_v45 }
 0x118   : > { %v924_v48 = vpop.f32.mrb[12].mxu0 }
 0x119   : > { %v451_v49 = vpop.f32.mrb[13].mxu0 }
 0x11a   : > { %v925_v50 = vpop.f32.mrb[14].mxu0 }
 0x11b   : > { %v473_v51 = vpack.c.bf16 %v925_v50, %v924_v48  ;;  %v454_v52 = vpop.f32.mrb[15].mxu0 }
 0x11c   : > { %v472_v53 = vpack.c.bf16 %v454_v52, %v451_v49 }
 0x11e   : > { %940 = vmatprep.mubr.msk.bf16.mxu1 %vm578_vm1, %v472_v53 }
 0x11f   : > { %941 = vmatmul.mubr.msk.bf16.gmra.mrb[12].mxu1 %vm578_vm1, %v473_v51 }
 0x1da   : > { %v930_v61 = vpop.f32.mrb[0].mxu1 }
 0x1db   : > { %v646_v62 = vadd.f32 %v930_v61, %v505_v55  ;;  %v637_v63 = vpop.f32.mrb[1].mxu1 }
 0x1dc   : > { %v638_v1 = vadd.f32 %v637_v63, %v495_v54  ;;  %v931_v2 = vpop.f32.mrb[2].mxu1 }
 0x1dd   : > { %703 = vst.msk [vmem:[%s1271_s14 + $0x10] sm:$0xff] %vm700_vm2, %v646_v62  ;;  %v649_v3 = vadd.f32 %v931_v2, %v510_v57  ;;  %v640_v4 = vpop.f32.mrb[3].mxu1 }
 0x1de   : > { %701 = vst.msk [vmem:[%s1271_s14] sm:$0xff] %vm700_vm2, %v638_v1  ;;  %v641_v5 = vadd.f32 %v640_v4, %v500_v56 }
 0x1df   : > { %704 = vst.msk [vmem:[%s1271_s14 + $0x18] sm:$0xff] %vm700_vm2, %v649_v3 }
 0x1e0   : > { %702 = vst.msk [vmem:[%s1271_s14 + $0x8] sm:$0xff] %vm700_vm2, %v641_v5 }
 0x1e2   : > { %v934_v8 = vpop.f32.mrb[4].mxu1 }
 0x1e3   : > { %v662_v9 = vadd.f32 %v934_v8, %v525_v60  ;;  %v653_v10 = vpop.f32.mrb[5].mxu1 }
 0x1e4   : > { %v654_v11 = vadd.f32 %v653_v10, %v515_v58  ;;  %v935_v12 = vpop.f32.mrb[6].mxu1 }
 0x1e5   : > { %707 = vst.msk [vmem:[%s1271_s14 + $0x30] sm:$0xff] %vm700_vm2, %v662_v9  ;;  %v665_v13 = vadd.f32 %v935_v12, %v530_v0  ;;  %v656_v14 = vpop.f32.mrb[7].mxu1 }
 0x1e6   : > { %705 = vst.msk [vmem:[%s1271_s14 + $0x20] sm:$0xff] %vm700_vm2, %v654_v11  ;;  %v657_v16 = vadd.f32 %v656_v14, %v520_v59 }
 0x1e7   : > { %708 = vst.msk [vmem:[%s1271_s14 + $0x38] sm:$0xff] %vm700_vm2, %v665_v13 }
 0x1e8   : > { %706 = vst.msk [vmem:[%s1271_s14 + $0x28] sm:$0xff] %vm700_vm2, %v657_v16 }
 0x1ea   : > { %v938_v18 = vpop.f32.mrb[8].mxu1 }
 0x1eb   : > { %v678_v19 = vadd.f32 %v938_v18, %v545_v15  ;;  %v669_v20 = vpop.f32.mrb[9].mxu1 }
 0x1ec   : > { %v670_v22 = vadd.f32 %v669_v20, %v535_v6  ;;  %v939_v23 = vpop.f32.mrb[10].mxu1 }
 0x1ed   : > { %711 = vst.msk [vmem:[%s1271_s14 + $0x50] sm:$0xff] %vm700_vm2, %v678_v19  ;;  %v681_v24 = vadd.f32 %v939_v23, %v550_v17  ;;  %v672_v25 = vpop.f32.mrb[11].mxu1 }
 0x1ee   : > { %709 = vst.msk [vmem:[%s1271_s14 + $0x40] sm:$0xff] %vm700_vm2, %v670_v22  ;;  %v673_v27 = vadd.f32 %v672_v25, %v540_v7 }
 0x1ef   : > { %712 = vst.msk [vmem:[%s1271_s14 + $0x58] sm:$0xff] %vm700_vm2, %v681_v24 }
 0x1f0   : > { %710 = vst.msk [vmem:[%s1271_s14 + $0x48] sm:$0xff] %vm700_vm2, %v673_v27 }
 0x1f2   : > { %v942_v29 = vpop.f32.mrb[12].mxu1 }
 0x1f3   : > { %v694_v30 = vadd.f32 %v942_v29, %v565_v28  ;;  %v685_v31 = vpop.f32.mrb[13].mxu1 }
 0x1f4   : > { %v686_v33 = vadd.f32 %v685_v31, %v555_v21  ;;  %v943_v34 = vpop.f32.mrb[14].mxu1 }
 0x1f5   : > { %715 = vst.msk [vmem:[%s1271_s14 + $0x70] sm:$0xff] %vm700_vm2, %v694_v30  ;;  %v697_v35 = vadd.f32 %v943_v34, %v570_v32  ;;  %v688_v36 = vpop.f32.mrb[15].mxu1 }
 0x1f6   : > { %713 = vst.msk [vmem:[%s1271_s14 + $0x60] sm:$0xff] %vm700_vm2, %v686_v33  ;;  %v689_v37 = vadd.f32 %v688_v36, %v560_v26 }
 0x1f7   : > { %716 = vst.msk [vmem:[%s1271_s14 + $0x78] sm:$0xff] %vm700_vm2, %v697_v35 }
 0x1f8   : > { %714 = vst.msk [vmem:[%s1271_s14 + $0x68] sm:$0xff] %vm700_vm2, %v689_v37 }
 0x1f9   : > { %1046 = shalt.err (!%p1043_p7)
}
 0x1fa   : > { %s1047_s10 = scalar_lea.hbm %s1303_s30, 2048  ;;  %s1051_s23 = scalar_lea.hbm %s1373_s4, 8192 }
 0x1fb   : > { %p1048_p9 = scmp.ne.s32.totalorder %s1303_s30, %s1047_s10  ;;  %p1052_p12 = scmp.lt.u32.totalorder %s1303_s30, %s1373_s4 }
 0x1fc   : > { %p1053_p13 = scmp.lt.u32.totalorder %s1051_s23, %s1047_s10  ;;  %p1055_p1 = scmp.lt.u32.totalorder %s1047_s10, %s1303_s30 }
 0x1fd   : > { %p1049_p10 = pnand %p1048_p9, %p1209_p3 }
 0x1fe   : > { %p1054_p0 = por %p1053_p13, %p1052_p12 }
 0x1ff   : > { %p1050_p11 = pneg %p1049_p10 }
 0x200   : > { %p1056_p2 = por %p1055_p1, %p1054_p0 }
 0x202   : > { %p1057_p4 = pnand %p1056_p2, %p1050_p11 }
 0x204   : > { %1060 = shalt.err (!%p1057_p4)
}
 0x205   : > { %s1131_s8 = smov 128   ;;  %s1132_s18 = smov 8  }
 0x206   : > { %944 = dma.vmem_to_hbm [thread:$0]  (%p1209_p3), %s1307_s27, 2048, %s1303_s30, %s1317_s5, %s1131_s8, %s1131_s8, %s1132_s18  }
 0x207 PF: > { %p950_p5 = scmp.ge.s32.totalorder %s1127_s22, 2  ;;  %s748_s6 = sand.u32 1, %s1099_s15  }
 0x208   : > { %s749_s9 = scalar_lea.sflag [#allocation3], %s748_s6 }
 0x209   : > { %p947_p6 = pnand %p950_p5, %p1218_p8 }
 0x20b   : > { %1094 = dma.done.wait (!%p947_p6), %s749_s9, 2048  }
 0x20c   : > { %1096 = vsyncadd (!%p947_p6), %s749_s9, 4294965248  ;;  %s17_s22 = sadd.s32 1, %s1127_s22   ;;  %s1376_s15 = smov %s1103_s16 }
 0x20d   : > { %p14_p7 = scmp.ge.s32.totalorder %s17_s22, 6   ;;  %s1377_s16 = smov %s1107_s17 }
 0x20e   : > { %s1378_s17 = smov %s1227_s7  ;;  %s1379_s18 = smov %s1119_s20 }
 0x20f   : > { %s1380_s19 = smov %s1123_s21  ;;  %s1381_s20 = smov %s1384_s25 }
 0x210   : > { %s1382_s21 = smov %s1388_s26  ;;  %16 = sbr.rel (!%p14_p7) target bundleno = 5 (0x5), region = 77 }
 0x217   :  { %754 = vsyncpa [#allocation3], 1 }
 0x218   :  { %756 = vsyncpa [#allocation3 + $0x1], 1 }

</bundles_post_ra>
